<compile_context>
chip_gen: v7x
topology: tpu7x:2x2x1
jax: 0.10.0
libtpu: 0.0.40
codegen_flags: <defaults>
</compile_context>

<pallas_src>
import jax
import jax.numpy as jnp
from jax.experimental import pallas as pl
from jax.experimental.pallas import tpu as pltpu

EPS = 1e-3
TM = 256                    # row tile (multiple of 8); pipeline over M = N*H*W
LANE = 128                  # pad output channels to multiples of 128 lanes
VMEM_LIMIT = 32 * 1024 * 1024
# Set to jnp.bfloat16 on v5e/v6e for ~2x MXU throughput and half the DMA bytes
# on the dominant `cols` operand (keep the BN epilogue in f32). f32 here so the
# small correctness check below stays within 1e-3 of the XLA reference.
MXU_DTYPE = jnp.float32


def _round_up(x, m):
    return ((x + m - 1) // m) * m


# ---------------------------------------------------------------------------
# Pallas kernels
# ---------------------------------------------------------------------------
def _mm_stats_kernel(cols_ref, w_ref, y_ref, sum_ref, ssq_ref):
    """Pass 1: conv-as-matmul tile + per-channel sum / sum-of-squares accum."""
    @pl.when(pl.program_id(0) == 0)
    def _():
        sum_ref[...] = jnp.zeros_like(sum_ref)
        ssq_ref[...] = jnp.zeros_like(ssq_ref)

    y = jnp.dot(cols_ref[...].astype(MXU_DTYPE), w_ref[...].astype(MXU_DTYPE),
                preferred_element_type=jnp.float32)
    y_ref[...] = y
    sum_ref[...] += jnp.sum(y, axis=0, keepdims=True)
    ssq_ref[...] += jnp.sum(y * y, axis=0, keepdims=True)


def _bn_relu_kernel(y_ref, scale_ref, shift_ref, o_ref):
    """Pass 2 (stage 1): folded BN (one FMA) + ReLU per tile."""
    o_ref[...] = jnp.maximum(y_ref[...] * scale_ref[...] + shift_ref[...], 0.0)


def _res_bn_relu_kernel(y2_ref, yi_ref, s2_ref, h2_ref, si_ref, hi_ref, o_ref):
    """Pass 2 (stage 2): folded BN on both branches + residual add + ReLU."""
    a = y2_ref[...] * s2_ref[...] + h2_ref[...]
    b = yi_ref[...] * si_ref[...] + hi_ref[...]
    o_ref[...] = jnp.maximum(a + b, 0.0)


# ---------------------------------------------------------------------------
# pallas_call wrappers
# ---------------------------------------------------------------------------
def matmul_stats(cols, w):
    """cols: (Mp, K) f32, w: (K, Cp) f32 -> (y (Mp, Cp), sum (1, Cp), ssq (1, Cp))."""
    Mp, K = cols.shape
    Cp = w.shape[1]
    grid = (Mp // TM,)
    return pl.pallas_call(
        _mm_stats_kernel,
        grid=grid,
        in_specs=[pl.BlockSpec((TM, K), lambda i: (i, 0)),
                  pl.BlockSpec((K, Cp), lambda i: (0, 0))],
        out_specs=(pl.BlockSpec((TM, Cp), lambda i: (i, 0)),
                   pl.BlockSpec((1, Cp), lambda i: (0, 0)),
                   pl.BlockSpec((1, Cp), lambda i: (0, 0))),
        out_shape=(jax.ShapeDtypeStruct((Mp, Cp), jnp.float32),
                   jax.ShapeDtypeStruct((1, Cp), jnp.float32),
                   jax.ShapeDtypeStruct((1, Cp), jnp.float32)),
        compiler_params=pltpu.CompilerParams(
            dimension_semantics=("arbitrary",),   # resident stat accumulators
            vmem_limit_bytes=VMEM_LIMIT),
    )(cols, w)


def bn_relu_apply(y, scale, shift):
    Mp, Cp = y.shape
    return pl.pallas_call(
        _bn_relu_kernel,
        grid=(Mp // TM,),
        in_specs=[pl.BlockSpec((TM, Cp), lambda i: (i, 0)),
                  pl.BlockSpec((1, Cp), lambda i: (0, 0)),
                  pl.BlockSpec((1, Cp), lambda i: (0, 0))],
        out_specs=pl.BlockSpec((TM, Cp), lambda i: (i, 0)),
        out_shape=jax.ShapeDtypeStruct((Mp, Cp), jnp.float32),
        compiler_params=pltpu.CompilerParams(
            dimension_semantics=("parallel",),    # shard over TCs on v7x
            vmem_limit_bytes=VMEM_LIMIT),
    )(y, scale, shift)


def res_bn_relu_apply(y2, yi, s2, h2, si, hi):
    Mp, Cp = y2.shape
    return pl.pallas_call(
        _res_bn_relu_kernel,
        grid=(Mp // TM,),
        in_specs=[pl.BlockSpec((TM, Cp), lambda i: (i, 0)),
                  pl.BlockSpec((TM, Cp), lambda i: (i, 0)),
                  pl.BlockSpec((1, Cp), lambda i: (0, 0)),
                  pl.BlockSpec((1, Cp), lambda i: (0, 0)),
                  pl.BlockSpec((1, Cp), lambda i: (0, 0)),
                  pl.BlockSpec((1, Cp), lambda i: (0, 0))],
        out_specs=pl.BlockSpec((TM, Cp), lambda i: (i, 0)),
        out_shape=jax.ShapeDtypeStruct((Mp, Cp), jnp.float32),
        compiler_params=pltpu.CompilerParams(
            dimension_semantics=("parallel",),
            vmem_limit_bytes=VMEM_LIMIT),
    )(y2, yi, s2, h2, si, hi)


# ---------------------------------------------------------------------------
# Host glue: quaternion weight assembly, im2col, padding, BN folding
# ---------------------------------------------------------------------------
def quaternion_conv_weight(key, in_ch, out_ch, k):
    """Hamilton-product weight assembly, same as QuaternionConv2d.forward. OIHW."""
    oq, iq = out_ch // 4, in_ch // 4
    kr, ki, kj, kk = jax.random.split(key, 4)
    scale = 1.0 / float(iq * k * k) ** 0.5
    r = jax.random.normal(kr, (oq, iq, k, k), jnp.float32) * scale
    i = jax.random.normal(ki, (oq, iq, k, k), jnp.float32) * scale
    j = jax.random.normal(kj, (oq, iq, k, k), jnp.float32) * scale
    q = jax.random.normal(kk, (oq, iq, k, k), jnp.float32) * scale
    row_r = jnp.concatenate([r, -i, -j, -q], axis=1)
    row_i = jnp.concatenate([i,  r, -q,  j], axis=1)
    row_j = jnp.concatenate([j,  q,  r, -i], axis=1)
    row_k = jnp.concatenate([q, -j,  i,  r], axis=1)
    return jnp.concatenate([row_r, row_i, row_j, row_k], axis=0)  # (O, I, k, k)


def oihw_to_mat(w):
    """(O, I, kh, kw) -> (kh*kw*I, O), channel-fastest, matching im2col layout."""
    O, I, kh, kw = w.shape
    return jnp.transpose(w, (2, 3, 1, 0)).reshape(kh * kw * I, O)


def im2col_3x3(x_nhwc):
    N, H, W, C = x_nhwc.shape
    xp = jnp.pad(x_nhwc, ((0, 0), (1, 1), (1, 1), (0, 0)))
    patches = [xp[:, dh:dh + H, dw:dw + W, :] for dh in range(3) for dw in range(3)]
    return jnp.concatenate(patches, axis=-1).reshape(N * H * W, 9 * C)


def _pad_rows(a, mult):
    m = a.shape[0]
    mp = _round_up(m, mult)
    return a if mp == m else jnp.pad(a, ((0, mp - m), (0, 0)))


def _pad_cols(a, cp):
    c = a.shape[1]
    return a if cp == c else jnp.pad(a, ((0, 0), (0, cp - c)))


def _pad_vec_row(v, cp):
    v = v.reshape(1, -1)
    c = v.shape[1]
    return v if cp == c else jnp.pad(v, ((0, 0), (0, cp - c)))


def fold_bn(s, q, m, gamma, beta, cp):
    """Per-channel (1, Cp) folded BN params from sum / sum-of-squares."""
    mean = s / m
    var = jnp.maximum(q / m - mean * mean, 0.0)   # biased variance (train mode)
    g = _pad_vec_row(gamma, cp)
    b = _pad_vec_row(beta, cp)
    scale = g * jax.lax.rsqrt(var + EPS)
    shift = b - mean * scale
    return scale, shift


def make_params(key, in_ch, mid_ch, out_ch):
    ks = jax.random.split(key, 6)
    w1 = quaternion_conv_weight(ks[0], in_ch, mid_ch, 3)
    w2 = quaternion_conv_weight(ks[1], mid_ch, out_ch, 3)
    wid = quaternion_conv_weight(ks[2], in_ch, out_ch, 1)
    b1 = 0.1 * jax.random.normal(ks[3], (mid_ch,), jnp.float32)
    b2 = 0.1 * jax.random.normal(ks[4], (out_ch,), jnp.float32)
    bid = 0.1 * jax.random.normal(ks[5], (out_ch,), jnp.float32)
    # BatchNorm2d default init: weight=1, bias=0
    return dict(
        w1=w1, b1=b1, g1=jnp.ones((mid_ch,), jnp.float32), beta1=jnp.zeros((mid_ch,), jnp.float32),
        w2=w2, b2=b2, g2=jnp.ones((out_ch,), jnp.float32), beta2=jnp.zeros((out_ch,), jnp.float32),
        wid=wid, bid=bid, gi=jnp.ones((out_ch,), jnp.float32), betai=jnp.zeros((out_ch,), jnp.float32),
    )


def res_double_conv_q(x_nchw, p):
    N, Cin, H, W = x_nchw.shape
    Cmid = p['w1'].shape[0]
    Cout = p['w2'].shape[0]
    M = N * H * W
    Cmp = _round_up(Cmid, LANE)
    Cop = _round_up(Cout, LANE)

    x = jnp.transpose(x_nchw, (0, 2, 3, 1))            # NHWC
    xid = x.reshape(M, Cin)

    # ---- stage 1: conv_bn_1 + ReLU (two-pass BN) ----
    # NOTE: conv biases are dropped (cancelled exactly by train-mode BN mean).
    cols1 = _pad_rows(im2col_3x3(x), TM)
    w1m = _pad_cols(oihw_to_mat(p['w1']), Cmp)
    y1p, s1, q1 = matmul_stats(cols1, w1m)
    sc1, sh1 = fold_bn(s1, q1, float(M), p['g1'], p['beta1'], Cmp)
    y1 = bn_relu_apply(y1p, sc1, sh1)[:M, :Cmid]
    y1_nhwc = y1.reshape(N, H, W, Cmid)

    # ---- stage 2: conv_bn_2 + identity_bn(identity(x)) + add + ReLU ----
    cols2 = _pad_rows(im2col_3x3(y1_nhwc), TM)
    w2m = _pad_cols(oihw_to_mat(p['w2']), Cop)
    y2p, s2, q2 = matmul_stats(cols2, w2m)

    widm = _pad_cols(p['wid'][:, :, 0, 0].T, Cop)      # 1x1 conv -> (Cin, Cop)
    yip, si, qi = matmul_stats(_pad_rows(xid, TM), widm)

    sc2, sh2 = fold_bn(s2, q2, float(M), p['g2'], p['beta2'], Cop)
    sci, shi = fold_bn(si, qi, float(M), p['gi'], p['betai'], Cop)

    outp = res_bn_relu_apply(y2p, yip, sc2, sh2, sci, shi)
    out = outp[:M, :Cout].reshape(N, H, W, Cout)
    return jnp.transpose(out, (0, 3, 1, 2))            # back to NCHW


# ---------------------------------------------------------------------------
# Pure-JAX reference (NCHW convs + train-mode BN) for correctness check
# ---------------------------------------------------------------------------
def reference(x, p):
    def bn(y, g, b):
        m = jnp.mean(y, axis=(0, 2, 3), keepdims=True)
        v = jnp.mean((y - m) ** 2, axis=(0, 2, 3), keepdims=True)
        return (y - m) * jax.lax.rsqrt(v + EPS) * g[None, :, None, None] + b[None, :, None, None]

    def conv(z, w, b, pad):
        y = jax.lax.conv_general_dilated(z, w, (1, 1), [(pad, pad), (pad, pad)],
                                         dimension_numbers=('NCHW', 'OIHW', 'NCHW'))
        return y + b[None, :, None, None]

    out = jnp.maximum(bn(conv(x, p['w1'], p['b1'], 1), p['g1'], p['beta1']), 0.0)
    y2 = bn(conv(out, p['w2'], p['b2'], 1), p['g2'], p['beta2'])
    yi = bn(conv(x, p['wid'], p['bid'], 0), p['gi'], p['betai'])
    return jnp.maximum(y2 + yi, 0.0)


if __name__ == "__main__":
    key = jax.random.PRNGKey(0)
    kx, kp = jax.random.split(key)

    N, Cin, H, W = 2, 4, 16, 16        # quaternion convs require channels % 4 == 0
    Cmid, Cout = 8, 8
    x = jax.random.normal(kx, (N, Cin, H, W), jnp.float32)
    params = make_params(kp, Cin, Cmid, Cout)

    out = jax.block_until_ready(res_double_conv_q(x, params))
    ref = jax.block_until_ready(reference(x, params))

    assert out.shape == (N, Cout, H, W), out.shape
    assert jnp.allclose(out, ref, atol=1e-3, rtol=1e-3), \
        f"max abs err {jnp.max(jnp.abs(out - ref))}"
    print("KERNEL_OK")
</pallas_src>

<mosaic_0001>
module attributes {stable_mosaic.version = 11 : i64} {
  func.func @_mm_stats_kernel(%arg0: i32, %arg1: memref<256x36xf32, #tpu.memory_space<vmem>>, %arg2: memref<36x128xf32, #tpu.memory_space<vmem>>, %arg3: memref<256x128xf32, #tpu.memory_space<vmem>>, %arg4: memref<1x128xf32, #tpu.memory_space<vmem>>, %arg5: memref<1x128xf32, #tpu.memory_space<vmem>>) attributes {dimension_semantics = [#tpu.dimension_semantics<arbitrary>], iteration_bounds = array<i64: 2>, scalar_prefetch = 0 : i64, scratch_operands = 0 : i64, tpu.core_type = #tpu.core_type<tc>, window_params = [{transform_indices = @transform_0, window_bounds = array<i64: 256, 36>}, {pipeline_mode = #tpu.pipeline_mode<synchronous>, transform_indices = @transform_1, window_bounds = array<i64: 36, 128>}, {transform_indices = @transform_2, window_bounds = array<i64: 256, 128>}, {pipeline_mode = #tpu.pipeline_mode<synchronous>, transform_indices = @transform_3, window_bounds = array<i64: 1, 128>}, {pipeline_mode = #tpu.pipeline_mode<synchronous>, transform_indices = @transform_4, window_bounds = array<i64: 1, 128>}]} {
    %c0_i32 = arith.constant 0 : i32
    %0 = arith.cmpi eq, %arg0, %c0_i32 : i32
    %1 = arith.extui %0 : i1 to i32
    %c0_i32_0 = arith.constant 0 : i32
    %2 = arith.cmpi ne, %1, %c0_i32_0 : i32
    scf.if %2 {
      %cst_16 = arith.constant 0.000000e+00 : f32
      %18 = vector.broadcast %cst_16 : f32 to vector<1x128xf32>
      %c0_17 = arith.constant 0 : index
      %c0_18 = arith.constant 0 : index
      %19 = vector.load %arg4[%c0_17, %c0_18] : memref<1x128xf32, #tpu.memory_space<vmem>>, vector<1x128xf32>
      tpu.vector_store %arg4[%c0_17, %c0_18], %18 {strides = array<i32>} : memref<1x128xf32, #tpu.memory_space<vmem>>, vector<1x128xf32>,
      %cst_19 = arith.constant 0.000000e+00 : f32
      %20 = vector.broadcast %cst_19 : f32 to vector<1x128xf32>
      %c0_20 = arith.constant 0 : index
      %c0_21 = arith.constant 0 : index
      %21 = vector.load %arg5[%c0_20, %c0_21] : memref<1x128xf32, #tpu.memory_space<vmem>>, vector<1x128xf32>
      tpu.vector_store %arg5[%c0_20, %c0_21], %20 {strides = array<i32>} : memref<1x128xf32, #tpu.memory_space<vmem>>, vector<1x128xf32>,
    } else {
    }
    %c0 = arith.constant 0 : index
    %c0_1 = arith.constant 0 : index
    %3 = vector.load %arg1[%c0, %c0_1] : memref<256x36xf32, #tpu.memory_space<vmem>>, vector<256x36xf32>
    %c0_2 = arith.constant 0 : index
    %c0_3 = arith.constant 0 : index
    %4 = vector.load %arg2[%c0_2, %c0_3] : memref<36x128xf32, #tpu.memory_space<vmem>>, vector<36x128xf32>
    %cst = arith.constant dense<0.000000e+00> : vector<256x128xf32>
    %5 = tpu.matmul %3, %4, %cst {dimension_numbers = #tpu.dot_dimension_numbers<[1], [0], [0], [1], [0, 0, 1, 1], [], []>} : vector<256x36xf32>, vector<36x128xf32>, vector<256x128xf32> -> vector<256x128xf32>
    %c0_4 = arith.constant 0 : index
    %c0_5 = arith.constant 0 : index
    %6 = vector.load %arg3[%c0_4, %c0_5] : memref<256x128xf32, #tpu.memory_space<vmem>>, vector<256x128xf32>
    tpu.vector_store %arg3[%c0_4, %c0_5], %5 {strides = array<i32>} : memref<256x128xf32, #tpu.memory_space<vmem>>, vector<256x128xf32>,
    %c0_6 = arith.constant 0 : index
    %c0_7 = arith.constant 0 : index
    %7 = vector.load %arg4[%c0_6, %c0_7] : memref<1x128xf32, #tpu.memory_space<vmem>>, vector<1x128xf32>
    %cst_8 = arith.constant dense<0.000000e+00> : vector<128xf32>
    %8 = vector.multi_reduction <add>, %5, %cst_8 [0] : vector<256x128xf32> to vector<128xf32>
    %9 = vector.shape_cast %8 : vector<128xf32> to vector<1x128xf32>
    %10 = arith.addf %7, %9 : vector<1x128xf32>
    %c0_9 = arith.constant 0 : index
    %c0_10 = arith.constant 0 : index
    %11 = vector.load %arg4[%c0_9, %c0_10] : memref<1x128xf32, #tpu.memory_space<vmem>>, vector<1x128xf32>
    tpu.vector_store %arg4[%c0_9, %c0_10], %10 {strides = array<i32>} : memref<1x128xf32, #tpu.memory_space<vmem>>, vector<1x128xf32>,
    %c0_11 = arith.constant 0 : index
    %c0_12 = arith.constant 0 : index
    %12 = vector.load %arg5[%c0_11, %c0_12] : memref<1x128xf32, #tpu.memory_space<vmem>>, vector<1x128xf32>
    %13 = arith.mulf %5, %5 : vector<256x128xf32>
    %cst_13 = arith.constant dense<0.000000e+00> : vector<128xf32>
    %14 = vector.multi_reduction <add>, %13, %cst_13 [0] : vector<256x128xf32> to vector<128xf32>
    %15 = vector.shape_cast %14 : vector<128xf32> to vector<1x128xf32>
    %16 = arith.addf %12, %15 : vector<1x128xf32>
    %c0_14 = arith.constant 0 : index
    %c0_15 = arith.constant 0 : index
    %17 = vector.load %arg5[%c0_14, %c0_15] : memref<1x128xf32, #tpu.memory_space<vmem>>, vector<1x128xf32>
    tpu.vector_store %arg5[%c0_14, %c0_15], %16 {strides = array<i32>} : memref<1x128xf32, #tpu.memory_space<vmem>>, vector<1x128xf32>,
    return
  }
  func.func @transform_0(%arg0: i32) -> (i32, i32) {
    %c0_i32 = arith.constant 0 : i32
    %c0_i32_0 = arith.constant 0 : i32
    return %arg0, %c0_i32 : i32, i32
  }
  func.func @transform_1(%arg0: i32) -> (i32, i32) {
    %c0_i32 = arith.constant 0 : i32
    %c0_i32_0 = arith.constant 0 : i32
    %c0_i32_1 = arith.constant 0 : i32
    return %c0_i32, %c0_i32_0 : i32, i32
  }
  func.func @transform_2(%arg0: i32) -> (i32, i32) {
    %c0_i32 = arith.constant 0 : i32
    %c0_i32_0 = arith.constant 0 : i32
    return %arg0, %c0_i32 : i32, i32
  }
  func.func @transform_3(%arg0: i32) -> (i32, i32) {
    %c0_i32 = arith.constant 0 : i32
    %c0_i32_0 = arith.constant 0 : i32
    %c0_i32_1 = arith.constant 0 : i32
    return %c0_i32, %c0_i32_0 : i32, i32
  }
  func.func @transform_4(%arg0: i32) -> (i32, i32) {
    %c0_i32 = arith.constant 0 : i32
    %c0_i32_0 = arith.constant 0 : i32
    %c0_i32_1 = arith.constant 0 : i32
    return %c0_i32, %c0_i32_0 : i32, i32
  }
}

</mosaic_0001>

<bundles_post_ra>
// kernel: tpu_custom_call.1
= control target key start
LH: loop header
LB: loop body
LE: loop exit
PB: predicated region body
PF: predicated region fallthrough
CT: control target
= control target key end

     0   :  { %10 = vsyncpa [#allocation3], 0  ;;  %s1563_s0 = inlined_call_operand.vmem [shape: f32[512,36], index: 0, kind: input, shape index: {}]   ;;  %s1564_s1 = inlined_call_operand.vmem [shape: f32[36,128], index: 1, kind: input, shape index: {}]   ;;  %s1565_s2 = inlined_call_operand.hbm [shape: f32[512,128], index: 2, kind: output, shape index: {0}]   ;;  %s1566_s3 = inlined_call_operand.hbm [shape: f32[1,128], index: 3, kind: output, shape index: {1}]   ;;  %s1567_s4 = inlined_call_operand.hbm [shape: f32[1,128], index: 4, kind: output, shape index: {2}]  }
   0x1   :  { %12 = vsyncpa [#allocation3 + $0x1], 0 }
   0x2   :  { %13 = vsyncpa [#allocation5], 0  ;;  %s1194_s15 = smov 0   ;;  %s1196_s16 = smov 0  }
   0x3   :  { %s1198_s17 = smov 0   ;;  %s1200_s18 = smov 0  }
   0x4 LB: > { %s1215_s19 = sadd.s32 4294967295, %s1161_s18   ;;  %s827_s20 = sadd.s32 4294967294, %s1161_s18   ;;  %s1161_s18 = sphi %s1200_s18, %s1573_s18   ;;  %s1157_s17 = sphi %s1198_s17, %s1572_s17   ;;  %s1153_s16 = sphi %s1196_s16, %s1571_s16   ;;  %s1149_s15 = sphi %s1194_s15, %s1570_s15  }
   0x5   : > { %s1219_s21 = sadd.s32 1, %s1161_s18   ;;  %s73_s22 = sadd.s32 1, %s1157_s17 }
   0x6   : > { %s70_s23 = ssub.s32 %s1161_s18, %s1219_s21  ;;  %p83_p0 = scmp.ne.s32.totalorder %s1157_s17, %s1153_s16 }
   0x7   : > { %p71_p1 = scmp.eq.s32.totalorder %s70_s23, 0  ;;  %p84_p2 = scmp.eq.s32.totalorder %s1215_s19, 1 }
   0x8   : > { %p89_p3 = scmp.ne.s32.totalorder %s1153_s16, %s1149_s15  ;;  %p90_p4 = scmp.eq.s32.totalorder %s827_s20, 1 }
   0x9   : > { %s1230_s24 = scalar_select %p71_p1, %s1157_s17, %s73_s22  }
   0xa   : > { %p1234_p5 = por %p84_p2, %p83_p0  ;;  %p1238_p6 = por %p90_p4, %p89_p3 }
   0xb   : > { %p830_p7 = scmp.ge.s32.totalorder %s1161_s18, 1  ;;  %p162_p8 = scmp.lt.s32.totalorder %s1161_s18, 3 }
   0xd   : > { %p163_p9 = pnand %p830_p7, %p162_p8 }
   0xe   : > { %s181_s27 = sand.u32 (!%p163_p9), 1, %s1153_s16   ;;  %s832_s28 = sshll.u32 (!%p163_p9), %s1215_s19, 5 }
   0xf   : > { %166 = sbr.rel (%p163_p9) target bundleno = 380 (0x17c), region = 28  ;;  %s831_s29 = sshll.u32 (!%p163_p9), %s181_s27, 8 }
  0x10   : > { %p189_p10 = scmp.lt.s32.totalorder (!%p163_p9), %s832_s28, 63  ;;  %s1253_s8 = scalar_lea.vmem (!%p163_p9), [#allocation2], %s831_s29 }
  0x11   : > { %p834_p11 = scmp.ne.s32.totalorder (!%p163_p9), %s1215_s19, 0 }
  0x16   : > { %s1575_s28 = smov (!%p189_p10, %s832_s28), 63  ;;  %198 = sbr.rel (%p834_p11) target bundleno = 29 (0x1d), region = 32 }
  0x17   : > { %s833_s30 = sshll.u32 %s1575_s28, 3  ;;  %v1163_v0 = vmov (!%p834_p11), 0.0  }
  0x18   : > { %s1251_s7 = scalar_lea.vmem %s1563_s0, %s833_s30  ;;  %199 = vst [vmem:[#allocation4] sm:$0x1] (!%p834_p11), %v1163_v0  ;;  %200 = vst [vmem:[#allocation6] sm:$0x1] (!%p834_p11), %v1163_v0 }
  0x1d PF: > { %v233_v1 = vld [vmem:[%s1564_s1] sm:$0xff]  ;;  %v234_v2 = vld [vmem:[%s1564_s1 + $0x8] sm:$0xff]  ;;  %v235_v3 = vld [vmem:[%s1564_s1 + $0x10] sm:$0xff]  ;;  %vm238_vm0 = vcmask 293888   ;;  %vm335_vm1 = vcmask 1043456   ;;  %s877_s29 = sshll.u32 %s1215_s19, 12 }
  0x1e   : > { %v973_v4 = vpack.c.bf16 %v234_v2, %v233_v1  ;;  %v236_v5 = vld [vmem:[%s1564_s1 + $0x18] sm:$0xff]  ;;  %v201_v6 = vld [vmem:[%s1251_s7] sm:$0xff]  ;;  %v202_v10 = vld [vmem:[%s1251_s7 + $0x8] sm:$0xff]  ;;  %s722_s30 = sshll.u32 %s1253_s8, 4  ;;  %s1426_s9 = scalar_lea.sflag [#allocation3], %s181_s27  ;;  %s1412_s30 = int_to_ptr.vmem [resolvable:$true] %s722_s30 }
  0x1f   : > { %v977_v7 = vpack.c.bf16 %v236_v5, %v235_v3  ;;  %925 = vmatprep.mubr.msk.f32.mxu0 %vm238_vm0, %v201_v6  ;;  %v237_v8 = vld [vmem:[%s1564_s1 + $0x20] sm:$0xf]  ;;  %v218_v11 = vld [vmem:[%s1251_s7 + $0x88] sm:$0xff]  ;;  %v203_v12 = vld [vmem:[%s1251_s7 + $0x10] sm:$0xff]  ;;  %s1043_s10 = scalar_lea.vmem %s1412_s30, 4096  ;;  %s1164_s11 = smov [#allocation2]  }
  0x20   : > { %974 = vmatprep.subr.bf16.mxu0 %v973_v4  ;;  %981 = vmatprep.subr.bf16.mxu1 %v973_v4  ;;  %v217_v9 = vld [vmem:[%s1251_s7 + $0x80] sm:$0xff]  ;;  %v219_v13 = vld [vmem:[%s1251_s7 + $0x90] sm:$0xff]  ;;  %v204_v14 = vld [vmem:[%s1251_s7 + $0x18] sm:$0xff]  ;;  %p1044_p12 = scmp.ne.s32.totalorder %s1412_s30, %s1043_s10  ;;  %s1047_s12 = sshll.u32 %s1164_s11, 4  ;;  %s1048_s12 = int_to_ptr.vmem [resolvable:$false] %s1047_s12 }
  0x21   : > { %976 = vmatpush3.bf16.msra.mxu0 %v973_v4  ;;  %984 = vmatpush3.bf16.msra.mxu1 %v973_v4  ;;  %v220_v15 = vld [vmem:[%s1251_s7 + $0x98] sm:$0xff]  ;;  %v205_v16 = vld [vmem:[%s1251_s7 + $0x20] sm:$0xff]  ;;  %v206_v18 = vld [vmem:[%s1251_s7 + $0x28] sm:$0xff]  ;;  %s1049_s13 = scalar_lea.vmem %s1048_s12, 8192  ;;  %p1050_p1 = scmp.lt.s32.totalorder %s1412_s30, %s1048_s12 }
  0x22   : > { %978 = vmatprep.subr.bf16.mxu0 %v977_v7  ;;  %982 = vmatprep.subr.bf16.mxu1 %v977_v7  ;;  %v221_v17 = vld [vmem:[%s1251_s7 + $0xa0] sm:$0xff]  ;;  %v222_v19 = vld [vmem:[%s1251_s7 + $0xa8] sm:$0xff]  ;;  %v207_v20 = vld [vmem:[%s1251_s7 + $0x30] sm:$0xff]  ;;  %p1045_p13 = pnand %p1044_p12, %p1234_p5  ;;  %p1051_p3 = scmp.lt.s32.totalorder %s1049_s13, %s1043_s10 }
  0x23   : > { %949 = vmatprep.mubr.msk.f32.mxu1 %vm238_vm0, %v217_v9  ;;  %v223_v21 = vld [vmem:[%s1251_s7 + $0xb0] sm:$0xff]  ;;  %v208_v22 = vld [vmem:[%s1251_s7 + $0x38] sm:$0xff]  ;;  %v209_v24 = vld [vmem:[%s1251_s7 + $0x40] sm:$0xff] }
  0x24   : > { %v224_v23 = vld [vmem:[%s1251_s7 + $0xb8] sm:$0xff]  ;;  %v225_v25 = vld [vmem:[%s1251_s7 + $0xc0] sm:$0xff]  ;;  %v210_v26 = vld [vmem:[%s1251_s7 + $0x48] sm:$0xff]  ;;  %p1046_p0 = pneg %p1045_p13  ;;  %p1052_p4 = por %p1051_p3, %p1050_p1 }
  0x25   : > { %980 = vmatpush3.bf16.msra.mxu0 %v977_v7  ;;  %985 = vmatpush3.bf16.msra.mxu1 %v977_v7  ;;  %v226_v27 = vld [vmem:[%s1251_s7 + $0xc8] sm:$0xff]  ;;  %v211_v28 = vld [vmem:[%s1251_s7 + $0x50] sm:$0xff]  ;;  %v212_v30 = vld [vmem:[%s1251_s7 + $0x58] sm:$0xff] }
  0x26   : > { %923 = vmatprep.subr.msk.mxu0 %vm335_vm1, %v237_v8  ;;  %983 = vmatprep.subr.msk.mxu1 %vm335_vm1, %v237_v8  ;;  %v227_v29 = vld [vmem:[%s1251_s7 + $0xd0] sm:$0xff]  ;;  %v228_v31 = vld [vmem:[%s1251_s7 + $0xd8] sm:$0xff]  ;;  %v213_v32 = vld [vmem:[%s1251_s7 + $0x60] sm:$0xff]  ;;  %p1053_p7 = pnand %p1052_p4, %p1046_p0 }
  0x27   : > { %v229_v33 = vld [vmem:[%s1251_s7 + $0xe0] sm:$0xff]  ;;  %v214_v34 = vld [vmem:[%s1251_s7 + $0x68] sm:$0xff]  ;;  %v215_v36 = vld [vmem:[%s1251_s7 + $0x70] sm:$0xff] }
  0x28   : > { %v230_v35 = vld [vmem:[%s1251_s7 + $0xe8] sm:$0xff]  ;;  %v231_v37 = vld [vmem:[%s1251_s7 + $0xf0] sm:$0xff]  ;;  %v216_v38 = vld [vmem:[%s1251_s7 + $0x78] sm:$0xff] }
  0x29   : > { %924 = vmatpush3.msk.msra.mxu0 %vm335_vm1, %v237_v8  ;;  %986 = vmatpush3.msk.msra.mxu1 %vm335_vm1, %v237_v8  ;;  %v232_v39 = vld [vmem:[%s1251_s7 + $0xf8] sm:$0xff]  ;;  %s1410_s7 = scalar_lea.hbm %s1565_s2, %s877_s29 }
  0x2a   : > { %926 = vmatmul.mubr.msk.f32.vlgmr.msra.gmra.mrb[0].mxu0 %vm238_vm0, %v202_v10  ;;  %950 = vmatmul.mubr.msk.f32.vlgmr.msra.gmra.mrb[0].mxu1 %vm238_vm0, %v218_v11 }
  0x2b   : > { %928 = vmatprep.mubr.msk.f32.mxu0 %vm238_vm0, %v203_v12  ;;  %952 = vmatprep.mubr.msk.f32.mxu1 %vm238_vm0, %v219_v13 }
  0x2e   : > { %929 = vmatmul.mubr.msk.f32.gmra.mrb[2].mxu0 %vm238_vm0, %v204_v14  ;;  %953 = vmatmul.mubr.msk.f32.gmra.mrb[2].mxu1 %vm238_vm0, %v220_v15 }
  0x2f   : > { %931 = vmatprep.mubr.msk.f32.mxu0 %vm238_vm0, %v205_v16  ;;  %955 = vmatprep.mubr.msk.f32.mxu1 %vm238_vm0, %v221_v17 }
  0x32   : > { %932 = vmatmul.mubr.msk.f32.gmra.mrb[4].mxu0 %vm238_vm0, %v206_v18  ;;  %956 = vmatmul.mubr.msk.f32.gmra.mrb[4].mxu1 %vm238_vm0, %v222_v19 }
  0x33   : > { %934 = vmatprep.mubr.msk.f32.mxu0 %vm238_vm0, %v207_v20  ;;  %958 = vmatprep.mubr.msk.f32.mxu1 %vm238_vm0, %v223_v21 }
  0x36   : > { %935 = vmatmul.mubr.msk.f32.gmra.mrb[6].mxu0 %vm238_vm0, %v208_v22  ;;  %959 = vmatmul.mubr.msk.f32.gmra.mrb[6].mxu1 %vm238_vm0, %v224_v23 }
  0x37   : > { %937 = vmatprep.mubr.msk.f32.mxu0 %vm238_vm0, %v209_v24  ;;  %961 = vmatprep.mubr.msk.f32.mxu1 %vm238_vm0, %v225_v25 }
  0x3a   : > { %938 = vmatmul.mubr.msk.f32.gmra.mrb[8].mxu0 %vm238_vm0, %v210_v26  ;;  %962 = vmatmul.mubr.msk.f32.gmra.mrb[8].mxu1 %vm238_vm0, %v226_v27 }
  0x3b   : > { %940 = vmatprep.mubr.msk.f32.mxu0 %vm238_vm0, %v211_v28  ;;  %964 = vmatprep.mubr.msk.f32.mxu1 %vm238_vm0, %v227_v29 }
  0x3e   : > { %941 = vmatmul.mubr.msk.f32.gmra.mrb[10].mxu0 %vm238_vm0, %v212_v30  ;;  %965 = vmatmul.mubr.msk.f32.gmra.mrb[10].mxu1 %vm238_vm0, %v228_v31 }
  0x3f   : > { %943 = vmatprep.mubr.msk.f32.mxu0 %vm238_vm0, %v213_v32  ;;  %967 = vmatprep.mubr.msk.f32.mxu1 %vm238_vm0, %v229_v33 }
  0x42   : > { %944 = vmatmul.mubr.msk.f32.gmra.mrb[12].mxu0 %vm238_vm0, %v214_v34  ;;  %968 = vmatmul.mubr.msk.f32.gmra.mrb[12].mxu1 %vm238_vm0, %v230_v35 }
  0x43   : > { %946 = vmatprep.mubr.msk.f32.mxu0 %vm238_vm0, %v215_v36  ;;  %970 = vmatprep.mubr.msk.f32.mxu1 %vm238_vm0, %v231_v37 }
  0x46   : > { %947 = vmatmul.mubr.msk.f32.gmra.mrb[14].mxu0 %vm238_vm0, %v216_v38  ;;  %971 = vmatmul.mubr.msk.f32.gmra.mrb[14].mxu1 %vm238_vm0, %v232_v39 }
  0xfd   : > { %v927_v40 = vpop.f32.mrb[0].mxu0  ;;  %v1335_v41 = vpop.f32.mrb[0].mxu1 }
  0xfe   : > { %565 = vst [vmem:[%s1253_s8 + $0x8] sm:$0xff] %v927_v40  ;;  %v638_v42 = vmul.f32 %v927_v40, %v927_v40  ;;  %v405_v43 = vpop.f32.mrb[1].mxu0  ;;  %581 = vst [vmem:[%s1253_s8 + $0x88] sm:$0xff] %v1335_v41  ;;  %v1340_v44 = vpop.f32.mrb[1].mxu1 }
  0xff   : > { %564 = vst [vmem:[%s1253_s8] sm:$0xff] %v405_v43  ;;  %v597_v45 = vadd.f32 %v927_v40, %v405_v43  ;;  %v637_v46 = vmul.f32 %v405_v43, %v405_v43  ;;  %580 = vst [vmem:[%s1253_s8 + $0x80] sm:$0xff] %v1340_v44 }
 0x101   : > { %v669_v47 = vadd.f32 %v638_v42, %v637_v46  ;;  %v930_v48 = vpop.f32.mrb[2].mxu0  ;;  %v1345_v49 = vpop.f32.mrb[2].mxu1 }
 0x102   : > { %567 = vst [vmem:[%s1253_s8 + $0x18] sm:$0xff] %v930_v48  ;;  %v415_v50 = vpop.f32.mrb[3].mxu0  ;;  %583 = vst [vmem:[%s1253_s8 + $0x98] sm:$0xff] %v1345_v49  ;;  %v1350_v51 = vpop.f32.mrb[3].mxu1  ;;  %v640_v54 = vmul.f32 %v930_v48, %v930_v48 }
 0x103   : > { %566 = vst [vmem:[%s1253_s8 + $0x10] sm:$0xff] %v415_v50  ;;  %v598_v52 = vadd.f32 %v597_v45, %v415_v50  ;;  %v639_v53 = vmul.f32 %v415_v50, %v415_v50  ;;  %582 = vst [vmem:[%s1253_s8 + $0x90] sm:$0xff] %v1350_v51 }
 0x105   : > { %v670_v55 = vadd.f32 %v669_v47, %v639_v53  ;;  %v933_v56 = vpop.f32.mrb[4].mxu0  ;;  %v599_v57 = vadd.f32 %v930_v48, %v598_v52  ;;  %v1355_v58 = vpop.f32.mrb[4].mxu1 }
 0x106   : > { %569 = vst [vmem:[%s1253_s8 + $0x28] sm:$0xff] %v933_v56  ;;  %v425_v59 = vpop.f32.mrb[5].mxu0  ;;  %585 = vst [vmem:[%s1253_s8 + $0xa8] sm:$0xff] %v1355_v58  ;;  %v1360_v60 = vpop.f32.mrb[5].mxu1  ;;  %v642_v0 = vmul.f32 %v933_v56, %v933_v56 }
 0x107   : > { %568 = vst [vmem:[%s1253_s8 + $0x20] sm:$0xff] %v425_v59  ;;  %v600_v61 = vadd.f32 %v599_v57, %v425_v59  ;;  %v641_v62 = vmul.f32 %v425_v59, %v425_v59  ;;  %v671_v63 = vadd.f32 %v670_v55, %v640_v54  ;;  %584 = vst [vmem:[%s1253_s8 + $0xa0] sm:$0xff] %v1360_v60 }
 0x109   : > { %v672_v1 = vadd.f32 %v671_v63, %v641_v62  ;;  %v936_v2 = vpop.f32.mrb[6].mxu0  ;;  %v601_v3 = vadd.f32 %v933_v56, %v600_v61  ;;  %v1365_v4 = vpop.f32.mrb[6].mxu1 }
 0x10a   : > { %571 = vst [vmem:[%s1253_s8 + $0x38] sm:$0xff] %v936_v2  ;;  %v435_v5 = vpop.f32.mrb[7].mxu0  ;;  %587 = vst [vmem:[%s1253_s8 + $0xb8] sm:$0xff] %v1365_v4  ;;  %v1370_v6 = vpop.f32.mrb[7].mxu1  ;;  %v644_v10 = vmul.f32 %v936_v2, %v936_v2 }
 0x10b   : > { %570 = vst [vmem:[%s1253_s8 + $0x30] sm:$0xff] %v435_v5  ;;  %v602_v7 = vadd.f32 %v601_v3, %v435_v5  ;;  %v643_v8 = vmul.f32 %v435_v5, %v435_v5  ;;  %v673_v9 = vadd.f32 %v672_v1, %v642_v0  ;;  %586 = vst [vmem:[%s1253_s8 + $0xb0] sm:$0xff] %v1370_v6 }
 0x10d   : > { %v674_v11 = vadd.f32 %v673_v9, %v643_v8  ;;  %v939_v12 = vpop.f32.mrb[8].mxu0  ;;  %v603_v13 = vadd.f32 %v936_v2, %v602_v7  ;;  %v1375_v14 = vpop.f32.mrb[8].mxu1 }
 0x10e   : > { %573 = vst [vmem:[%s1253_s8 + $0x48] sm:$0xff] %v939_v12  ;;  %v445_v15 = vpop.f32.mrb[9].mxu0  ;;  %589 = vst [vmem:[%s1253_s8 + $0xc8] sm:$0xff] %v1375_v14  ;;  %v1380_v16 = vpop.f32.mrb[9].mxu1  ;;  %v646_v20 = vmul.f32 %v939_v12, %v939_v12 }
 0x10f   : > { %572 = vst [vmem:[%s1253_s8 + $0x40] sm:$0xff] %v445_v15  ;;  %v604_v17 = vadd.f32 %v603_v13, %v445_v15  ;;  %v645_v18 = vmul.f32 %v445_v15, %v445_v15  ;;  %v675_v19 = vadd.f32 %v674_v11, %v644_v10  ;;  %588 = vst [vmem:[%s1253_s8 + $0xc0] sm:$0xff] %v1380_v16 }
 0x111   : > { %v676_v21 = vadd.f32 %v675_v19, %v645_v18  ;;  %v942_v22 = vpop.f32.mrb[10].mxu0  ;;  %v605_v23 = vadd.f32 %v939_v12, %v604_v17  ;;  %v1385_v24 = vpop.f32.mrb[10].mxu1 }
 0x112   : > { %575 = vst [vmem:[%s1253_s8 + $0x58] sm:$0xff] %v942_v22  ;;  %v455_v25 = vpop.f32.mrb[11].mxu0  ;;  %591 = vst [vmem:[%s1253_s8 + $0xd8] sm:$0xff] %v1385_v24  ;;  %v1390_v26 = vpop.f32.mrb[11].mxu1  ;;  %v648_v30 = vmul.f32 %v942_v22, %v942_v22 }
 0x113   : > { %574 = vst [vmem:[%s1253_s8 + $0x50] sm:$0xff] %v455_v25  ;;  %v606_v27 = vadd.f32 %v605_v23, %v455_v25  ;;  %v647_v28 = vmul.f32 %v455_v25, %v455_v25  ;;  %v677_v29 = vadd.f32 %v676_v21, %v646_v20  ;;  %590 = vst [vmem:[%s1253_s8 + $0xd0] sm:$0xff] %v1390_v26 }
 0x115   : > { %v678_v31 = vadd.f32 %v677_v29, %v647_v28  ;;  %v945_v32 = vpop.f32.mrb[12].mxu0  ;;  %v607_v33 = vadd.f32 %v942_v22, %v606_v27  ;;  %v1395_v34 = vpop.f32.mrb[12].mxu1 }
 0x116   : > { %577 = vst [vmem:[%s1253_s8 + $0x68] sm:$0xff] %v945_v32  ;;  %v465_v35 = vpop.f32.mrb[13].mxu0  ;;  %593 = vst [vmem:[%s1253_s8 + $0xe8] sm:$0xff] %v1395_v34  ;;  %v1402_v36 = vpop.f32.mrb[13].mxu1  ;;  %v650_v40 = vmul.f32 %v945_v32, %v945_v32 }
 0x117   : > { %576 = vst [vmem:[%s1253_s8 + $0x60] sm:$0xff] %v465_v35  ;;  %v608_v37 = vadd.f32 %v607_v33, %v465_v35  ;;  %v649_v38 = vmul.f32 %v465_v35, %v465_v35  ;;  %v679_v39 = vadd.f32 %v678_v31, %v648_v30  ;;  %592 = vst [vmem:[%s1253_s8 + $0xe0] sm:$0xff] %v1402_v36 }
 0x119   : > { %v680_v42 = vadd.f32 %v679_v39, %v649_v38  ;;  %v948_v43 = vpop.f32.mrb[14].mxu0  ;;  %v609_v45 = vadd.f32 %v945_v32, %v608_v37  ;;  %v1414_v46 = vpop.f32.mrb[14].mxu1 }
 0x11a   : > { %579 = vst [vmem:[%s1253_s8 + $0x78] sm:$0xff] %v948_v43  ;;  %v475_v47 = vpop.f32.mrb[15].mxu0  ;;  %595 = vst [vmem:[%s1253_s8 + $0xf8] sm:$0xff] %v1414_v46  ;;  %v1419_v48 = vpop.f32.mrb[15].mxu1 }
 0x11b   : > { %578 = vst [vmem:[%s1253_s8 + $0x70] sm:$0xff] %v475_v47  ;;  %v610_v50 = vadd.f32 %v609_v45, %v475_v47  ;;  %v651_v52 = vmul.f32 %v475_v47, %v475_v47  ;;  %v681_v53 = vadd.f32 %v680_v42, %v650_v40  ;;  %594 = vst [vmem:[%s1253_s8 + $0xf0] sm:$0xff] %v1419_v48 }
 0x11c   : > { %1056 = shalt.err (!%p1053_p7)
}
 0x11d   : > { %s1057_s27 = scalar_lea.hbm %s1410_s7, 4096  ;;  %s1061_s20 = scalar_lea.hbm %s1565_s2, 8192 }
 0x11e   : > { %p1058_p8 = scmp.ne.s32.totalorder %s1410_s7, %s1057_s27  ;;  %p1062_p11 = scmp.lt.u32.totalorder %s1410_s7, %s1565_s2 }
 0x11f   : > { %p1063_p12 = scmp.lt.u32.totalorder %s1061_s20, %s1057_s27  ;;  %p1065_p0 = scmp.lt.u32.totalorder %s1057_s27, %s1410_s7 }
 0x120   : > { %p1059_p9 = pnand %p1058_p8, %p1234_p5 }
 0x121   : > { %p1064_p13 = por %p1063_p12, %p1062_p11 }
 0x122   : > { %p1060_p10 = pneg %p1059_p9 }
 0x123   : > { %p1066_p1 = por %p1065_p0, %p1064_p13 }
 0x125   : > { %p1067_p3 = pnand %p1066_p1, %p1060_p10 }
 0x127   : > { %1070 = shalt.err (!%p1067_p3)
}
 0x128   : > { %s1165_s28 = smov 128   ;;  %s1166_s29 = smov 8   ;;  %v652_v54 = vmul.f32 %v948_v43, %v948_v43  ;;  %v611_v55 = vadd.f32 %v948_v43, %v610_v50  ;;  %v682_v56 = vadd.f32 %v681_v53, %v651_v52  ;;  %v653_v57 = vmul.f32 %v1340_v44, %v1340_v44  ;;  %v596_v53 = vld [vmem:[#allocation4] sm:$0x1] }
 0x129   : > { %987 = dma.vmem_to_hbm [thread:$0]  (%p1234_p5), %s1412_s30, 4096, %s1410_s7, %s1426_s9, %s1165_s28, %s1165_s28, %s1166_s29   ;;  %v654_v62 = vmul.f32 %v1335_v41, %v1335_v41  ;;  %v655_v1 = vmul.f32 %v1350_v51, %v1350_v51  ;;  %v656_v5 = vmul.f32 %v1345_v49, %v1345_v49 }
 0x12a   : > { %v683_v59 = vadd.f32 %v682_v56, %v652_v54  ;;  %v612_v61 = vadd.f32 %v611_v55, %v1340_v44  ;;  %v657_v44 = vmul.f32 %v1360_v60, %v1360_v60  ;;  %s1167_s25 = smov [#allocation4]   ;;  %v636_v55 = vld [vmem:[#allocation6] sm:$0x1]  ;;  %s1168_s5 = smov [#allocation6]  }
 0x12b   : > { %s736_s30 = sshll.u32 %s1167_s25, 4  ;;  %s747_s6 = sshll.u32 %s1168_s5, 4  ;;  %s737_s30 = int_to_ptr.vmem [resolvable:$true] %s736_s30  ;;  %s1498_s6 = int_to_ptr.vmem [resolvable:$true] %s747_s6 }
 0x12c   : > { %v684_v63 = vadd.f32 %v683_v59, %v653_v57  ;;  %v613_v0 = vadd.f32 %v1335_v41, %v612_v61  ;;  %v658_v41 = vmul.f32 %v1355_v58, %v1355_v58  ;;  %s1071_s7 = scalar_lea.vmem %s737_s30, 16  ;;  %s1077_s9 = scalar_lea.vmem %s737_s30, 32 }
 0x12d   : > { %p1072_p5 = scmp.ne.s32.totalorder %s737_s30, %s1071_s7  ;;  %p1078_p8 = scmp.lt.s32.totalorder %s737_s30, %s737_s30 }
 0x12e   : > { %v614_v2 = vadd.f32 %v613_v0, %v1350_v51  ;;  %v685_v3 = vadd.f32 %v684_v63, %v654_v62  ;;  %v659_v51 = vmul.f32 %v1370_v6, %v1370_v6  ;;  %p1079_p9 = scmp.lt.s32.totalorder %s1077_s9, %s1071_s7 }
 0x12f   : > { %p1073_p4 = pnand %p1072_p5, %p84_p2 }
 0x130   : > { %v686_v7 = vadd.f32 %v685_v3, %v655_v1  ;;  %v615_v8 = vadd.f32 %v1345_v49, %v614_v2  ;;  %v660_v49 = vmul.f32 %v1365_v4, %v1365_v4  ;;  %p1080_p10 = por %p1079_p9, %p1078_p8 }
 0x131   : > { %p1074_p7 = pneg %p1073_p4 }
 0x132   : > { %v616_v9 = vadd.f32 %v615_v8, %v1360_v60  ;;  %v687_v10 = vadd.f32 %v686_v7, %v656_v5  ;;  %v661_v60 = vmul.f32 %v1380_v16, %v1380_v16 }
 0x133   : > { %p1081_p11 = pnand %p1080_p10, %p1074_p7 }
 0x134   : > { %v688_v11 = vadd.f32 %v687_v10, %v657_v44  ;;  %v617_v12 = vadd.f32 %v1355_v58, %v616_v9  ;;  %v662_v58 = vmul.f32 %v1375_v14, %v1375_v14 }
 0x136   : > { %v618_v13 = vadd.f32 %v617_v12, %v1370_v6  ;;  %v689_v15 = vadd.f32 %v688_v11, %v658_v41  ;;  %v663_v6 = vmul.f32 %v1390_v26, %v1390_v26 }
 0x138   : > { %v690_v17 = vadd.f32 %v689_v15, %v659_v51  ;;  %v619_v18 = vadd.f32 %v1365_v4, %v618_v13  ;;  %v664_v4 = vmul.f32 %v1385_v24, %v1385_v24 }
 0x13a   : > { %v620_v19 = vadd.f32 %v619_v18, %v1380_v16  ;;  %v691_v20 = vadd.f32 %v690_v17, %v660_v49  ;;  %v665_v16 = vmul.f32 %v1402_v36, %v1402_v36 }
 0x13c   : > { %v692_v21 = vadd.f32 %v691_v20, %v661_v60  ;;  %v621_v22 = vadd.f32 %v1375_v14, %v620_v19  ;;  %v666_v14 = vmul.f32 %v1395_v34, %v1395_v34 }
 0x13e   : > { %v622_v23 = vadd.f32 %v621_v22, %v1390_v26  ;;  %v693_v25 = vadd.f32 %v692_v21, %v662_v58  ;;  %v667_v26 = vmul.f32 %v1419_v48, %v1419_v48 }
 0x140   : > { %v694_v27 = vadd.f32 %v693_v25, %v663_v6  ;;  %v623_v28 = vadd.f32 %v1385_v24, %v622_v23  ;;  %v668_v24 = vmul.f32 %v1414_v46, %v1414_v46 }
 0x142   : > { %v624_v29 = vadd.f32 %v623_v28, %v1402_v36  ;;  %v695_v30 = vadd.f32 %v694_v27, %v664_v4 }
 0x144   : > { %v696_v31 = vadd.f32 %v695_v30, %v665_v16  ;;  %v625_v32 = vadd.f32 %v1395_v34, %v624_v29 }
 0x146   : > { %v626_v33 = vadd.f32 %v625_v32, %v1419_v48  ;;  %v697_v35 = vadd.f32 %v696_v31, %v666_v14 }
 0x148   : > { %v627_v37 = vadd.f32 %v1414_v46, %v626_v33  ;;  %v698_v38 = vadd.f32 %v697_v35, %v667_v26 }
 0x14a   : > { %v628_v36 = vrot.slane %v627_v37, 4  ;;  %v699_v39 = vadd.f32 %v698_v38, %v668_v24 }
 0x14c   : > { %v629_v40 = vadd.f32 %v628_v36, %v627_v37  ;;  %v700_v42 = vrot.slane %v699_v39, 4 }
 0x14e   : > { %v630_v43 = vrot.slane %v629_v40, 2  ;;  %v701_v45 = vadd.f32 %v700_v42, %v699_v39 }
 0x150   : > { %v631_v47 = vadd.f32 %v630_v43, %v629_v40  ;;  %v702_v34 = vrot.slane %v701_v45, 2 }
 0x152   : > { %v632_v50 = vrot.slane %v631_v47, 1  ;;  %v703_v52 = vadd.f32 %v702_v34, %v701_v45 }
 0x154   : > { %v633_v48 = vadd.f32 %v632_v50, %v631_v47  ;;  %v704_v54 = vrot.slane %v703_v52, 1 }
 0x156   : > { %v634_v46 = vadd.f32 %v633_v48, %v596_v53  ;;  %v705_v56 = vadd.f32 %v704_v54, %v703_v52 }
 0x158   : > { %635 = vst [vmem:[#allocation4] sm:$0x1] %v634_v46  ;;  %v706_v57 = vadd.f32 %v705_v56, %v636_v55 }
 0x159   : > { %1084 = shalt.err (!%p1081_p11)
}
 0x15a   : > { %s1085_s12 = scalar_lea.hbm %s1566_s3, 16 }
 0x15b   : > { %p1086_p12 = scmp.ne.s32.totalorder %s1566_s3, %s1085_s12  ;;  %p1091_p1 = scmp.lt.u32.totalorder %s1085_s12, %s1566_s3 }
 0x15d   : > { %p1087_p13 = pnand %p1086_p12, %p84_p2 }
 0x15f   : > { %p1088_p0 = pneg %p1087_p13 }
 0x161   : > { %p1093_p3 = pnand %p1091_p1, %p1088_p0 }
 0x163   : > { %1096 = shalt.err (!%p1093_p3)
}
 0x164   : > { %989 = dma.vmem_to_hbm [thread:$0]  (%p84_p2), %s737_s30, 16, %s1566_s3, [#allocation5]   ;;  %707 = vst [vmem:[#allocation6] sm:$0x1] %v706_v57 }
 0x165   : > { %s1097_s23 = scalar_lea.vmem %s1498_s6, 16  ;;  %s1103_s28 = scalar_lea.vmem %s1498_s6, 32 }
 0x166   : > { %p1098_p5 = scmp.ne.s32.totalorder %s1498_s6, %s1097_s23  ;;  %p1104_p8 = scmp.lt.s32.totalorder %s1498_s6, %s1498_s6 }
 0x167   : > { %p1105_p9 = scmp.lt.s32.totalorder %s1103_s28, %s1097_s23 }
 0x168   : > { %p1099_p4 = pnand %p1098_p5, %p84_p2 }
 0x169   : > { %p1106_p10 = por %p1105_p9, %p1104_p8 }
 0x16a   : > { %p1100_p7 = pneg %p1099_p4 }
 0x16c   : > { %p1107_p11 = pnand %p1106_p10, %p1100_p7 }
 0x16e   : > { %1110 = shalt.err (!%p1107_p11)
}
 0x16f   : > { %s1111_s5 = scalar_lea.hbm %s1567_s4, 16 }
 0x170   : > { %p1112_p12 = scmp.ne.s32.totalorder %s1567_s4, %s1111_s5  ;;  %p1117_p1 = scmp.lt.u32.totalorder %s1111_s5, %s1567_s4 }
 0x172   : > { %p1113_p13 = pnand %p1112_p12, %p84_p2 }
 0x174   : > { %p1114_p0 = pneg %p1113_p13 }
 0x176   : > { %p1119_p3 = pnand %p1117_p1, %p1114_p0 }
 0x178   : > { %1122 = shalt.err (!%p1119_p3)
}
 0x179   : > { %991 = dma.vmem_to_hbm [thread:$0]  (%p84_p2), %s1498_s6, 16, %s1567_s4, [#allocation5]  }
 0x17a   : > { %1140 = dma.done.wait (%p84_p2), [#allocation5], 32  }
 0x17b   : > { %1142 = vsyncadd (%p84_p2), [#allocation5], 4294967264 }
 0x17c PF: > { %p1005_p5 = scmp.ge.s32.totalorder %s1161_s18, 2  ;;  %s767_s13 = sand.u32 1, %s1149_s15  }
 0x17d   : > { %s768_s27 = scalar_lea.sflag [#allocation3], %s767_s13 }
 0x17e   : > { %p998_p4 = pnand %p1005_p5, %p1238_p6 }
 0x180   : > { %1144 = dma.done.wait (!%p998_p4), %s768_s27, 4096  }
 0x181   : > { %1146 = vsyncadd (!%p998_p4), %s768_s27, 4294963200  ;;  %p16_p7 = scmp.ge.s32.totalorder %s1219_s21, 4   ;;  %s1570_s15 = smov %s1153_s16 }
 0x182   : > { %s1571_s16 = smov %s1157_s17  ;;  %s1572_s17 = smov %s1230_s24 }
 0x183   : > { %s1573_s18 = smov %s1219_s21  ;;  %18 = sbr.rel (!%p16_p7) target bundleno = 4 (0x4), region = 83 }
 0x18a   :  { %773 = vsyncpa [#allocation3], 1 }
 0x18b   :  { %775 = vsyncpa [#allocation3 + $0x1], 1 }
 0x18c   :  { %776 = vsyncpa [#allocation5], 1 }

</bundles_post_ra>
